<compile_context>
chip_gen: v7x
topology: tpu7x:2x2x1
jax: 0.10.0
libtpu: 0.0.40
codegen_flags: <defaults>
</compile_context>

<pallas_src>
import math
import functools

import jax
import jax.numpy as jnp
import numpy as np
from jax import lax
from jax.experimental import pallas as pl
from jax.experimental.pallas import tpu as pltpu


_VMEM = pl.BlockSpec(memory_space=pltpu.MemorySpace.VMEM)


# ----------------------------------------------------------------------------
# Tile selection helper: largest multiple of `unit` that divides `dim` and is
# <= max_tile; if dim itself is small (or no aligned divisor exists), use the
# full dim (block_shape == full array dim is always legal).
# ----------------------------------------------------------------------------
def _pick_tile(dim, unit, max_tile):
    if dim <= max_tile:
        return dim
    for t in range(max_tile, unit - 1, -unit):
        if dim % t == 0:
            return t
    return dim


# ----------------------------------------------------------------------------
# Kernels
# ----------------------------------------------------------------------------

def _linear_onepass_kernel(x_ref, w_ref, b_ref, o_ref, *, compute_dtype):
    """Single contraction step: y = x @ W^T + b.
    x:(tm,h_in)  W:(tn,h_in)  b:(1,tn)  out:(tm,tn).  No accumulator scratch."""
    xb = x_ref[...]
    wb = w_ref[...]
    if compute_dtype is not None:
        xb = xb.astype(compute_dtype)
        wb = wb.astype(compute_dtype)
    acc = lax.dot_general(
        xb, wb,
        dimension_numbers=(((1,), (1,)), ((), ())),
        preferred_element_type=jnp.float32)
    o_ref[...] = (acc + b_ref[...].astype(jnp.float32)).astype(o_ref.dtype)


def _linear_tiled_kernel(x_ref, w_ref, b_ref, o_ref, acc_ref, *, compute_dtype):
    """Tiled y = x @ W^T + b.  x:(tm,tk)  W:(tn,tk)  b:(1,tn)  out:(tm,tn)."""
    k = pl.program_id(2)

    @pl.when(k == 0)
    def _():
        acc_ref[...] = jnp.zeros_like(acc_ref)

    xb = x_ref[...]
    wb = w_ref[...]
    if compute_dtype is not None:
        # Cast on the VMEM tile inside the kernel (free VPU filler); keep the
        # MXU accumulation in f32 regardless of operand dtype.
        xb = xb.astype(compute_dtype)
        wb = wb.astype(compute_dtype)

    # Contract both operands on their last (lane) dim -> MXU consumes W in its
    # native [h_out, h_in] layout, no XLU transpose.
    acc_ref[...] += lax.dot_general(
        xb, wb,
        dimension_numbers=(((1,), (1,)), ((), ())),
        preferred_element_type=jnp.float32)

    @pl.when(k == pl.num_programs(2) - 1)
    def _():
        out = acc_ref[...] + b_ref[...].astype(jnp.float32)  # f32 epilogue
        o_ref[...] = out.astype(o_ref.dtype)


def _weff_task0_kernel(lm_ref, rm_ref, w_ref, o_ref):
    """W_eff tile = (LM @ RM) + weight   (task == 0 / lambdas == 1.0)."""
    o_ref[...] = (jnp.dot(lm_ref[...], rm_ref[...],
                          preferred_element_type=jnp.float32)
                  + w_ref[...])


def _pb_rmw_kernel(wlm_ref, wrm_ref, ru_ref, o_ref):
    """rmw = reshape_unc @ (weights_mat_LM @ weights_mat_RM).

    Multiplication order matches the PyTorch module exactly (weights_mat is
    materialized first) to preserve floating-point semantics."""
    wmat = jnp.dot(wlm_ref[...], wrm_ref[...],
                   preferred_element_type=jnp.float32)
    o_ref[...] = jnp.dot(ru_ref[...], wmat,
                         preferred_element_type=jnp.float32)


def _weff_taskn_kernel(lm_ref, rm_ref, pb_ref, w_ref, o_ref):
    """W_eff column-tile = concat([LM@RM, pb], axis=0) + weight   (task > 0)."""
    unc = jnp.dot(lm_ref[...], rm_ref[...],
                  preferred_element_type=jnp.float32)
    r = jnp.concatenate([unc, pb_ref[...]], axis=0)
    o_ref[...] = r + w_ref[...]


# ----------------------------------------------------------------------------
# pallas_call wrappers
# ----------------------------------------------------------------------------

def tiled_linear(x2, w, b, *, tm_max=512, tn_max=512, tk_max=512,
                 compute_dtype=None):
    """y = x2 @ w^T + b with a tiled, accumulator-based Pallas kernel."""
    m, h_in = x2.shape
    h_out, h_in2 = w.shape
    assert h_in == h_in2
    tm = _pick_tile(m, 8, tm_max)        # sublane dim of x/out blocks
    tn = _pick_tile(h_out, 128, tn_max)  # lane dim of out, sublane dim of w
    tk = _pick_tile(h_in, 128, tk_max)   # lane dim of x and w (contraction)
    b2 = b.reshape(1, h_out)

    itemsize = 4
    vmem_bytes = itemsize * (2 * tm * tk + 2 * tn * tk + 2 * tm * tn
                             + tm * tn + 2 * tn) + (2 << 20)
    vmem_limit = int(min(max(4 * vmem_bytes, 32 << 20), 48 << 20))
    cost = pl.CostEstimate(
        flops=2 * m * h_in * h_out,
        transcendentals=0,
        bytes_accessed=itemsize * (m * h_in + h_out * h_in
                                   + m * h_out + h_out))

    if h_in // tk == 1:
        # Whole contraction fits a single tile: no accumulator, 2-D grid.
        kernel = functools.partial(_linear_onepass_kernel,
                                   compute_dtype=compute_dtype)
        return pl.pallas_call(
            kernel,
            out_shape=jax.ShapeDtypeStruct((m, h_out), x2.dtype),
            grid_spec=pltpu.PrefetchScalarGridSpec(
                num_scalar_prefetch=0,
                grid=(m // tm, h_out // tn),
                in_specs=[
                    pl.BlockSpec((tm, h_in), lambda i, j: (i, 0)),   # x
                    pl.BlockSpec((tn, h_in), lambda i, j: (j, 0)),   # W
                    pl.BlockSpec((1, tn), lambda i, j: (0, j)),      # bias
                ],
                out_specs=pl.BlockSpec((tm, tn), lambda i, j: (i, j)),
            ),
            compiler_params=pltpu.CompilerParams(
                dimension_semantics=("parallel", "parallel"),
                vmem_limit_bytes=vmem_limit,
            ),
            cost_estimate=cost,
        )(x2, w, b2)

    kernel = functools.partial(_linear_tiled_kernel,
                               compute_dtype=compute_dtype)
    grid = (m // tm, h_out // tn, h_in // tk)
    return pl.pallas_call(
        kernel,
        out_shape=jax.ShapeDtypeStruct((m, h_out), x2.dtype),
        grid_spec=pltpu.PrefetchScalarGridSpec(
            num_scalar_prefetch=0,
            grid=grid,
            in_specs=[
                pl.BlockSpec((tm, tk), lambda i, j, k: (i, k)),   # x
                pl.BlockSpec((tn, tk), lambda i, j, k: (j, k)),   # W
                pl.BlockSpec((1, tn), lambda i, j, k: (0, j)),    # bias
            ],
            out_specs=pl.BlockSpec((tm, tn), lambda i, j, k: (i, j)),
            scratch_shapes=[pltpu.VMEM((tm, tn), jnp.float32)],
        ),
        compiler_params=pltpu.CompilerParams(
            dimension_semantics=("parallel", "parallel", "arbitrary"),
            vmem_limit_bytes=vmem_limit,
        ),
        cost_estimate=cost,
    )(x2, w, b2)


def build_weff_task0(lm, rm, w):
    """W_eff = unc_filt_LM @ unc_filt_RM + weight, tiled over (h_out, h_in)."""
    h_out, K = lm.shape
    _, h_in = rm.shape
    tn = _pick_tile(h_out, 8, 256)
    tc = _pick_tile(h_in, 128, 512)
    grid = (h_out // tn, h_in // tc)
    return pl.pallas_call(
        _weff_task0_kernel,
        out_shape=jax.ShapeDtypeStruct((h_out, h_in), jnp.float32),
        grid_spec=pltpu.PrefetchScalarGridSpec(
            num_scalar_prefetch=0,
            grid=grid,
            in_specs=[
                pl.BlockSpec((tn, K), lambda i, j: (i, 0)),
                pl.BlockSpec((K, tc), lambda i, j: (0, j)),
                pl.BlockSpec((tn, tc), lambda i, j: (i, j)),
            ],
            out_specs=pl.BlockSpec((tn, tc), lambda i, j: (i, j)),
        ),
        compiler_params=pltpu.CompilerParams(
            dimension_semantics=("parallel", "parallel")),
    )(lm, rm, w)


def build_pb_rmw(wlm, wrm, reshape_unc):
    """rmw = reshape_unc @ (wLM @ wRM); both factor matmuls fused in one call.

    Weight-factor sized, executed once per forward: full-array VMEM blocks.
    """
    h_in = reshape_unc.shape[0]
    lamb_rem = wrm.shape[1]
    return pl.pallas_call(
        _pb_rmw_kernel,
        out_shape=jax.ShapeDtypeStruct((h_in, lamb_rem), jnp.float32),
        in_specs=[_VMEM, _VMEM, _VMEM],
        out_specs=_VMEM,
    )(wlm, wrm, reshape_unc)


def build_weff_taskn(lm, rm, pb, w):
    """W_eff = concat([LM@RM, pb], 0) + weight, tiled over h_in columns.

    The row-band concat happens in VMEM inside the kernel -- no HBM
    concatenate of the (h_out, h_in) R matrix.
    """
    lamb_num, K = lm.shape
    _, h_in = rm.shape
    lamb_rem = pb.shape[0]
    h_out = w.shape[0]
    assert lamb_num + lamb_rem == h_out
    tc = _pick_tile(h_in, 128, 512)
    grid = (h_in // tc,)
    return pl.pallas_call(
        _weff_taskn_kernel,
        out_shape=jax.ShapeDtypeStruct((h_out, h_in), jnp.float32),
        grid_spec=pltpu.PrefetchScalarGridSpec(
            num_scalar_prefetch=0,
            grid=grid,
            in_specs=[
                pl.BlockSpec((lamb_num, K), lambda j: (0, 0)),
                pl.BlockSpec((K, tc), lambda j: (0, j)),
                pl.BlockSpec((lamb_rem, tc), lambda j: (0, j)),
                pl.BlockSpec((h_out, tc), lambda j: (0, j)),
            ],
            out_specs=pl.BlockSpec((h_out, tc), lambda j: (0, j)),
        ),
        compiler_params=pltpu.CompilerParams(
            dimension_semantics=("parallel",)),
    )(lm, rm, pb, w)


# ----------------------------------------------------------------------------
# Parameter construction (deterministic, mirrors RG_FC.__init__ shapes)
# ----------------------------------------------------------------------------

def _kaiming_uniform(key, shape):
    # torch.nn.init.kaiming_uniform_ (a=0): bound = sqrt(6/fan_in), fan_in=shape[1]
    fan_in = shape[1]
    bound = math.sqrt(6.0 / fan_in)
    return jax.random.uniform(key, shape, jnp.float32, -bound, bound)


def init_rg_fc(key, *, RG, K, h_in, h_out, lambdas, scale, task, bias=True):
    ks = jax.random.split(key, 8)
    p = {
        "cfg": dict(RG=RG, K=K, h_in=h_in, h_out=h_out,
                    lambdas=lambdas, scale=scale, task=task, bias=bias),
        "weight": _kaiming_uniform(ks[0], (h_out, h_in)),
        "bias": (jax.random.normal(ks[1], (h_out,), jnp.float32)
                 if bias else jnp.zeros((h_out,), jnp.float32)),
    }
    if RG:
        lamb_num = math.ceil(lambdas * h_out)
        lamb_rem_num = h_out - lamb_num
        p["cfg"]["lamb_num"] = lamb_num
        p["cfg"]["lamb_rem_num"] = lamb_rem_num
        if task == 0 or lambdas == 1.0:
            p["unc_filt_LM"] = _kaiming_uniform(ks[2], (h_out, K)) * scale
            p["unc_filt_RM"] = _kaiming_uniform(ks[3], (K, h_in)) * scale
        else:
            n_filt = h_out + (task - 1) * lamb_num
            p["unc_filt_LM"] = _kaiming_uniform(ks[2], (lamb_num, K)) * scale
            p["unc_filt_RM"] = _kaiming_uniform(ks[3], (K, h_in)) * scale
            p["weights_mat_LM"] = _kaiming_uniform(ks[4], (n_filt, K))
            p["weights_mat_RM"] = _kaiming_uniform(ks[5], (K, lamb_rem_num))
            # In PyTorch this buffer holds filters from prior tasks; filled
            # deterministically here for a runnable demo.
            p["concat_unc_filter"] = jax.random.normal(
                ks[6], (n_filt, h_in), jnp.float32) * 0.02
    return p


# ----------------------------------------------------------------------------
# Forward (Pallas) and pure-JAX reference
# ----------------------------------------------------------------------------

def rg_fc_forward(params, x, *, compute_dtype=None):
    cfg = params["cfg"]
    h_in, h_out = cfg["h_in"], cfg["h_out"]
    lead = x.shape[:-1]
    x2 = x.reshape(-1, h_in)
    w = params["weight"]
    b = params["bias"]

    if cfg["RG"]:
        if cfg["task"] == 0 or cfg["lambdas"] == 1.0:
            w_eff = build_weff_task0(params["unc_filt_LM"],
                                     params["unc_filt_RM"], w)
        else:
            lamb_rem = cfg["lamb_rem_num"]
            n_filt = params["concat_unc_filter"].shape[0]
            # Raw reshapes (NOT transposes), exactly as in the PyTorch module.
            reshape_unc = jnp.reshape(params["concat_unc_filter"],
                                      (h_in, n_filt))
            rmw = build_pb_rmw(params["weights_mat_LM"],
                               params["weights_mat_RM"], reshape_unc)
            # TODO(synk): this raw 2-D reshape across the lane dim stays in
            # plain JAX between the two builder kernels; Mosaic in-kernel
            # reshapes of that form are not reliably lowerable.
            pb = jnp.reshape(rmw, (lamb_rem, h_in))
            w_eff = build_weff_taskn(params["unc_filt_LM"],
                                     params["unc_filt_RM"], pb, w)
    else:
        w_eff = w  # plain linear: no zero-R materialization

    out2 = tiled_linear(x2, w_eff, b, compute_dtype=compute_dtype)
    return out2.reshape(*lead, h_out)


def rg_fc_forward_ref(params, x):
    cfg = params["cfg"]
    h_in = cfg["h_in"]
    w = params["weight"]
    if cfg["RG"]:
        if cfg["task"] == 0 or cfg["lambdas"] == 1.0:
            R = params["unc_filt_LM"] @ params["unc_filt_RM"]
        else:
            unc_filt = params["unc_filt_LM"] @ params["unc_filt_RM"]
            weights_mat = params["weights_mat_LM"] @ params["weights_mat_RM"]
            n_filt = params["concat_unc_filter"].shape[0]
            reshape_unc = jnp.reshape(params["concat_unc_filter"],
                                      (h_in, n_filt))
            rmw = reshape_unc @ weights_mat
            pb_filt = jnp.reshape(rmw, (cfg["lamb_rem_num"], h_in))
            R = jnp.concatenate([unc_filt, pb_filt], axis=0)
        weight = R + w
    else:
        weight = w
    return x @ weight.T + params["bias"]


# ----------------------------------------------------------------------------

if __name__ == "__main__":
    key = jax.random.PRNGKey(0)
    k_x, k_p0, k_p1 = jax.random.split(key, 3)

    B, S, H_IN, H_OUT, K = 2, 8, 32, 32, 8
    x = jax.random.normal(k_x, (B, S, H_IN), jnp.float32)

    # Branch A: task == 0 (fused W_eff builder + tiled linear)
    params0 = init_rg_fc(k_p0, RG=True, K=K, h_in=H_IN, h_out=H_OUT,
                         lambdas=0.5, scale=1e-2, task=0, bias=True)
    y0 = jax.block_until_ready(rg_fc_forward(params0, x))
    y0_ref = rg_fc_forward_ref(params0, x)
    np.testing.assert_allclose(np.asarray(y0), np.asarray(y0_ref),
                               rtol=1e-5, atol=1e-5)

    # Branch B: task == 1, lambdas < 1 (piggyback filter-bank composition)
    params1 = init_rg_fc(k_p1, RG=True, K=K, h_in=H_IN, h_out=H_OUT,
                         lambdas=0.5, scale=1e-2, task=1, bias=True)
    y1 = jax.block_until_ready(rg_fc_forward(params1, x))
    y1_ref = rg_fc_forward_ref(params1, x)
    np.testing.assert_allclose(np.asarray(y1), np.asarray(y1_ref),
                               rtol=1e-5, atol=1e-5)

    # Branch C: RG == False (plain tiled linear, no zero-R)
    params2 = dict(params0)
    params2["cfg"] = dict(params0["cfg"], RG=False)
    y2 = jax.block_until_ready(rg_fc_forward(params2, x))
    y2_ref = rg_fc_forward_ref(params2, x)
    np.testing.assert_allclose(np.asarray(y2), np.asarray(y2_ref),
                               rtol=1e-5, atol=1e-5)

    assert y0.shape == (B, S, H_OUT) and y1.shape == (B, S, H_OUT)
    print("KERNEL_OK")
</pallas_src>

<mosaic_0001>
module attributes {stable_mosaic.version = 11 : i64} {
  func.func @_weff_task0_kernel(%arg0: i32, %arg1: i32, %arg2: memref<32x8xf32, #tpu.memory_space<vmem>>, %arg3: memref<8x32xf32, #tpu.memory_space<vmem>>, %arg4: memref<32x32xf32, #tpu.memory_space<vmem>>, %arg5: memref<32x32xf32, #tpu.memory_space<vmem>>) attributes {dimension_semantics = [#tpu.dimension_semantics<parallel>, #tpu.dimension_semantics<parallel>], iteration_bounds = array<i64: 1, 1>, scalar_prefetch = 0 : i64, scratch_operands = 0 : i64, tpu.core_type = #tpu.core_type<tc>, window_params = [{transform_indices = @transform_0, window_bounds = array<i64: 32, 8>}, {transform_indices = @transform_1, window_bounds = array<i64: 8, 32>}, {transform_indices = @transform_2, window_bounds = array<i64: 32, 32>}, {transform_indices = @transform_3, window_bounds = array<i64: 32, 32>}]} {
    %c0 = arith.constant 0 : index
    %c0_0 = arith.constant 0 : index
    %0 = vector.load %arg2[%c0, %c0_0] : memref<32x8xf32, #tpu.memory_space<vmem>>, vector<32x8xf32>
    %c0_1 = arith.constant 0 : index
    %c0_2 = arith.constant 0 : index
    %1 = vector.load %arg3[%c0_1, %c0_2] : memref<8x32xf32, #tpu.memory_space<vmem>>, vector<8x32xf32>
    %cst = arith.constant dense<0.000000e+00> : vector<32x32xf32>
    %2 = tpu.matmul %0, %1, %cst {dimension_numbers = #tpu.dot_dimension_numbers<[1], [0], [0], [1], [0, 0, 1, 1], [], []>} : vector<32x8xf32>, vector<8x32xf32>, vector<32x32xf32> -> vector<32x32xf32>
    %c0_3 = arith.constant 0 : index
    %c0_4 = arith.constant 0 : index
    %3 = vector.load %arg4[%c0_3, %c0_4] : memref<32x32xf32, #tpu.memory_space<vmem>>, vector<32x32xf32>
    %4 = arith.addf %2, %3 : vector<32x32xf32>
    %c0_5 = arith.constant 0 : index
    %c0_6 = arith.constant 0 : index
    %5 = vector.load %arg5[%c0_5, %c0_6] : memref<32x32xf32, #tpu.memory_space<vmem>>, vector<32x32xf32>
    tpu.vector_store %arg5[%c0_5, %c0_6], %4 {strides = array<i32>} : memref<32x32xf32, #tpu.memory_space<vmem>>, vector<32x32xf32>,
    return
  }
  func.func @transform_0(%arg0: i32, %arg1: i32) -> (i32, i32) {
    %c0_i32 = arith.constant 0 : i32
    %c0_i32_0 = arith.constant 0 : i32
    return %arg0, %c0_i32 : i32, i32
  }
  func.func @transform_1(%arg0: i32, %arg1: i32) -> (i32, i32) {
    %c0_i32 = arith.constant 0 : i32
    %c0_i32_0 = arith.constant 0 : i32
    return %c0_i32, %arg1 : i32, i32
  }
  func.func @transform_2(%arg0: i32, %arg1: i32) -> (i32, i32) {
    %c0_i32 = arith.constant 0 : i32
    return %arg0, %arg1 : i32, i32
  }
  func.func @transform_3(%arg0: i32, %arg1: i32) -> (i32, i32) {
    %c0_i32 = arith.constant 0 : i32
    return %arg0, %arg1 : i32, i32
  }
}

</mosaic_0001>

<bundles_post_ra>
// kernel: tpu_custom_call.1
= control target key start
LH: loop header
LB: loop body
LE: loop exit
PB: predicated region body
PF: predicated region fallthrough
CT: control target
= control target key end

     0   :  { %vm24_vm0 = vcmask 64512   ;;  %s251_s0 = inlined_call_operand.vmem [shape: f32[32,8], index: 0, kind: input, shape index: {}]   ;;  %s252_s1 = inlined_call_operand.vmem [shape: f32[8,32], index: 1, kind: input, shape index: {}]   ;;  %s253_s2 = inlined_call_operand.vmem [shape: f32[32,32], index: 2, kind: input, shape index: {}]   ;;  %s254_s3 = inlined_call_operand.hbm [shape: f32[32,32], index: 3, kind: output, shape index: {}]  }
   0x1   :  { %v19_v0 = vld [vmem:[%s252_s1] sm:$0xff]  ;;  %v17_v2 = vld [vmem:[%s251_s0 + $0x10] sm:$0xff]  ;;  %v16_v3 = vld [vmem:[%s251_s0 + $0x8] sm:$0xff] }
   0x2   :  { %v15_v1 = vld [vmem:[%s251_s0] sm:$0xff]  ;;  %152 = vmatprep.subr.mxu0 %v19_v0  ;;  %160 = vmatprep.subr.mxu1 %v19_v0  ;;  %v18_v4 = vld [vmem:[%s251_s0 + $0x18] sm:$0xff] }
   0x3   :  { %153 = vmatpush3.msra.mxu0 %v19_v0  ;;  %161 = vmatpush3.msra.mxu1 %v19_v0 }
   0x4   :  { %8 = vsyncpa [#allocation3], 0  ;;  %154 = vmatprep.mubr.msk.f32.mxu0 %vm24_vm0, %v15_v1  ;;  %157 = vmatprep.mubr.msk.f32.mxu1 %vm24_vm0, %v17_v2  ;;  %v21_v5 = vld [vmem:[%s253_s2 + $0x8] sm:$0xff]  ;;  %v23_v6 = vld [vmem:[%s253_s2 + $0x18] sm:$0xff]  ;;  %s189_s25 = smov [#allocation2]   ;;  %vm122_vm1 = vcmask 261120  }
   0x5   :  { %155 = vmatmul.mubr.msk.f32.vlgmr.msra.gmra.mrb[0].mxu0 %vm24_vm0, %v16_v3  ;;  %158 = vmatmul.mubr.msk.f32.vlgmr.msra.gmra.mrb[0].mxu1 %vm24_vm0, %v18_v4  ;;  %s132_s26 = sshll.u32 %s189_s25, 4  ;;  %v20_v7 = vld [vmem:[%s253_s2] sm:$0xff]  ;;  %v22_v8 = vld [vmem:[%s253_s2 + $0x10] sm:$0xff]  ;;  %s133_s26 = int_to_ptr.vmem [resolvable:$true] %s132_s26 }
   0x6   :  { %s165_s30 = scalar_lea.vmem %s133_s26, 512  ;;  %p170_p1 = scmp.lt.s32.totalorder %s133_s26, %s133_s26 }
   0x7   :  { %p166_p0 = scmp.ne.s32.totalorder %s133_s26, %s165_s30  ;;  %p171_p2 = scmp.lt.s32.totalorder %s165_s30, %s165_s30 }
   0x9   :  { %p172_p3 = por %p171_p2, %p170_p1 }
   0xb   :  { %p173_p4 = pnand %p172_p3, %p166_p0 }
  0xd8   :  { %v156_v9 = vpop.f32.mrb[0].mxu0  ;;  %v159_v10 = vpop.f32.mrb[0].mxu1 }
  0xd9   :  { %v109_v11 = vadd.f32 %v156_v9, %v21_v5  ;;  %v119_v12 = vadd.f32 %v159_v10, %v23_v6  ;;  %v103_v13 = vpop.f32.mrb[1].mxu0  ;;  %v113_v14 = vpop.f32.mrb[1].mxu1 }
  0xda   :  { %v104_v15 = vadd.f32 %v103_v13, %v20_v7  ;;  %v114_v16 = vadd.f32 %v113_v14, %v22_v8 }
  0xdb   :  { %124 = vst.msk [vmem:[#allocation2 + $0x8] sm:$0xff] %vm122_vm1, %v109_v11  ;;  %126 = vst.msk [vmem:[#allocation2 + $0x18] sm:$0xff] %vm122_vm1, %v119_v12 }
  0xdc   :  { %123 = vst.msk [vmem:[#allocation2] sm:$0xff] %vm122_vm1, %v104_v15  ;;  %125 = vst.msk [vmem:[#allocation2 + $0x10] sm:$0xff] %vm122_vm1, %v114_v16 }
  0xdd   :  { %176 = shalt.err (!%p173_p4)
}
  0xde   :  { %s177_s5 = scalar_lea.hbm %s254_s3, 512 }
  0xdf   :  { %p178_p5 = scmp.ne.s32.totalorder %s254_s3, %s177_s5  ;;  %p181_p6 = scmp.lt.u32.totalorder %s177_s5, %s254_s3 }
  0xe1   :  { %p183_p7 = pnand %p181_p6, %p178_p5 }
  0xe3   :  { %186 = shalt.err (!%p183_p7)
}
  0xe4   :  { %s190_s10 = smov 128   ;;  %s191_s11 = smov 8  }
  0xe5   :  { %138 = dma.vmem_to_hbm [thread:$0]  %s133_s26, 512, %s254_s3, [#allocation3], %s190_s10, %s190_s10, %s191_s11  }
  0xe6   :  { %187 = dma.done.wait [#allocation3], 512  }
  0xe7   :  { %188 = vsyncadd [#allocation3], 4294966784 }
  0xe8   :  { %142 = vsyncpa [#allocation3], 1 }

</bundles_post_ra>
